<compile_context>
chip_gen: v5e
topology: v5e:2x2
jax: 0.10.0
libtpu: 0.0.40
codegen_flags: <defaults>
</compile_context>

<pallas_src>
import jax
import jax.numpy as jnp
from jax.experimental import pallas as pl
from jax.experimental.pallas import tpu as pltpu


def _mse_partial_kernel(x_ref, t_ref, psum_ref, acc_ref):
    """Accumulates sum((x - t)^2) for one shard; writes a (1, lanes) partial.

    x_ref, t_ref : (tile_rows, lanes) input tiles
    psum_ref     : (1, lanes) per-shard partial sums (written on last step)
    acc_ref      : (8, lanes) f32 VMEM accumulator (persists across grid steps)
    """
    step = pl.program_id(1)

    @pl.when(step == 0)
    def _():
        acc_ref[...] = jnp.zeros_like(acc_ref)

    x = x_ref[...].astype(jnp.float32)
    t = t_ref[...].astype(jnp.float32)
    d = x - t
    sq = d * d  # (tile_rows, lanes)

    tile_rows, lanes = sq.shape
    # Fold sublane groups of 8 together: pure VPU (vreg-to-vreg) adds, no XLU.
    acc_ref[...] += jnp.sum(sq.reshape(tile_rows // 8, 8, lanes), axis=0)

    @pl.when(step == pl.num_programs(1) - 1)
    def _():
        # One small sublane reduce per shard in the epilogue.
        psum_ref[...] = jnp.sum(acc_ref[...], axis=0, keepdims=True)


def _round_up(a, b):
    return (a + b - 1) // b * b


def content_loss(x, target, *, lanes=512, target_tile_rows=512, max_shards=2):
    """Mirrors ContentLoss.forward: returns (input_passthrough, mse_loss).

    The pass-through is the original `x` (no kernel traffic); the kernel only
    computes the MSE loss.
    """
    assert x.shape == target.shape, "input/target shape mismatch"
    total_n = x.size

    xf = x.reshape(-1)
    tf = target.reshape(-1)

    # Lane-dense slab: (rows, lanes) with lanes a multiple of 128.
    rows = _round_up(total_n, lanes) // lanes
    tile_rows = min(target_tile_rows, _round_up(rows, 8))
    # Split across 2 TensorCores (v7x) only if there is at least one full tile
    # per shard; otherwise run a single shard.
    shards = max_shards if rows >= max_shards * tile_rows else 1
    rows_padded = _round_up(rows, shards * tile_rows)
    padded_elems = rows_padded * lanes

    if padded_elems != total_n:
        pad = padded_elems - total_n
        xf = jnp.pad(xf, (0, pad))          # zero padding contributes 0 to SSE
        tf = jnp.pad(tf, (0, pad))

    x2 = xf.reshape(rows_padded, lanes)
    t2 = tf.reshape(rows_padded, lanes)

    steps = rows_padded // (shards * tile_rows)

    in_map = lambda p, n: (p * steps + n, 0)

    psums = pl.pallas_call(
        _mse_partial_kernel,
        out_shape=jax.ShapeDtypeStruct((shards, lanes), jnp.float32),
        grid_spec=pltpu.PrefetchScalarGridSpec(
            num_scalar_prefetch=0,
            grid=(shards, steps),
            in_specs=[
                pl.BlockSpec((tile_rows, lanes), in_map),
                pl.BlockSpec((tile_rows, lanes), in_map),
            ],
            out_specs=pl.BlockSpec((1, lanes), lambda p, n: (p, 0)),
            scratch_shapes=[pltpu.VMEM((8, lanes), jnp.float32)],
        ),
        compiler_params=pltpu.CompilerParams(
            dimension_semantics=("parallel", "arbitrary"),
        ),
    )(x2, t2)

    # Tiny follow-up reduce over (shards, lanes) partials, then mean.
    loss = jnp.sum(psums) / jnp.float32(total_n)

    # ContentLoss.forward returns its input unchanged (loss stored as .loss);
    # here we return it alongside the loss instead of mutating module state.
    return x, loss


if __name__ == "__main__":
    key = jax.random.PRNGKey(0)
    k1, k2 = jax.random.split(key)

    # Small NCHW shapes, as in the module spec.
    x = jax.random.normal(k1, (2, 4, 16, 16), dtype=jnp.float32)
    target = jax.random.normal(k2, (2, 4, 16, 16), dtype=jnp.float32)

    out, loss = content_loss(x, target)
    out = jax.block_until_ready(out)
    loss = jax.block_until_ready(loss)

    ref_loss = jnp.mean((x - target) ** 2)
    assert jnp.allclose(out, x), "pass-through mismatch"
    assert jnp.allclose(loss, ref_loss, rtol=1e-5, atol=1e-6), "loss mismatch"

    # Larger shape to exercise the multi-step + 2-shard (parallel) path.
    k3, k4 = jax.random.split(k2)
    xb = jax.random.normal(k3, (4, 64, 64, 64), dtype=jnp.float32)
    tb = jax.random.normal(k4, (4, 64, 64, 64), dtype=jnp.float32)
    outb, lossb = content_loss(xb, tb)
    lossb = jax.block_until_ready(lossb)
    ref_lossb = jnp.mean((xb - tb) ** 2)
    assert jnp.allclose(lossb, ref_lossb, rtol=1e-5, atol=1e-6), "big loss mismatch"

    print("KERNEL_OK")
</pallas_src>

<mosaic_0001>
module attributes {stable_mosaic.version = 11 : i64} {
  func.func @_mse_partial_kernel(%arg0: i32, %arg1: i32, %arg2: memref<8x512xf32, #tpu.memory_space<vmem>>, %arg3: memref<8x512xf32, #tpu.memory_space<vmem>>, %arg4: memref<1x512xf32, #tpu.memory_space<vmem>>, %arg5: memref<8x512xf32, #tpu.memory_space<vmem>>) attributes {dimension_semantics = [#tpu.dimension_semantics<parallel>, #tpu.dimension_semantics<arbitrary>], iteration_bounds = array<i64: 1, 1>, scalar_prefetch = 0 : i64, scratch_operands = 1 : i64, tpu.core_type = #tpu.core_type<tc>, window_params = [{transform_indices = @transform_0, window_bounds = array<i64: 8, 512>}, {transform_indices = @transform_1, window_bounds = array<i64: 8, 512>}, {transform_indices = @transform_2, window_bounds = array<i64: 1, 512>}]} {
    %c0_i32 = arith.constant 0 : i32
    %0 = arith.cmpi eq, %arg1, %c0_i32 : i32
    %1 = arith.extui %0 : i1 to i32
    %c0_i32_0 = arith.constant 0 : i32
    %2 = arith.cmpi ne, %1, %c0_i32_0 : i32
    scf.if %2 {
      %cst_10 = arith.constant 0.000000e+00 : f32
      %15 = vector.broadcast %cst_10 : f32 to vector<8x512xf32>
      %c0_11 = arith.constant 0 : index
      %c0_12 = arith.constant 0 : index
      %16 = vector.load %arg5[%c0_11, %c0_12] : memref<8x512xf32, #tpu.memory_space<vmem>>, vector<8x512xf32>
      tpu.vector_store %arg5[%c0_11, %c0_12], %15 {strides = array<i32>} : memref<8x512xf32, #tpu.memory_space<vmem>>, vector<8x512xf32>,
    } else {
    }
    %c0 = arith.constant 0 : index
    %c0_1 = arith.constant 0 : index
    %3 = vector.load %arg2[%c0, %c0_1] : memref<8x512xf32, #tpu.memory_space<vmem>>, vector<8x512xf32>
    %c0_2 = arith.constant 0 : index
    %c0_3 = arith.constant 0 : index
    %4 = vector.load %arg3[%c0_2, %c0_3] : memref<8x512xf32, #tpu.memory_space<vmem>>, vector<8x512xf32>
    %5 = arith.subf %3, %4 : vector<8x512xf32>
    %6 = arith.mulf %5, %5 : vector<8x512xf32>
    %c0_4 = arith.constant 0 : index
    %c0_5 = arith.constant 0 : index
    %7 = vector.load %arg5[%c0_4, %c0_5] : memref<8x512xf32, #tpu.memory_space<vmem>>, vector<8x512xf32>
    %8 = vector.shape_cast %6 : vector<8x512xf32> to vector<1x8x512xf32>
    %cst = arith.constant dense<0.000000e+00> : vector<8x512xf32>
    %9 = vector.multi_reduction <add>, %8, %cst [0] : vector<1x8x512xf32> to vector<8x512xf32>
    %10 = arith.addf %7, %9 : vector<8x512xf32>
    %c0_6 = arith.constant 0 : index
    %c0_7 = arith.constant 0 : index
    %11 = vector.load %arg5[%c0_6, %c0_7] : memref<8x512xf32, #tpu.memory_space<vmem>>, vector<8x512xf32>
    tpu.vector_store %arg5[%c0_6, %c0_7], %10 {strides = array<i32>} : memref<8x512xf32, #tpu.memory_space<vmem>>, vector<8x512xf32>,
    %c0_i32_8 = arith.constant 0 : i32
    %12 = arith.cmpi eq, %arg1, %c0_i32_8 : i32
    %13 = arith.extui %12 : i1 to i32
    %c0_i32_9 = arith.constant 0 : i32
    %14 = arith.cmpi ne, %13, %c0_i32_9 : i32
    scf.if %14 {
      %c0_10 = arith.constant 0 : index
      %c0_11 = arith.constant 0 : index
      %15 = vector.load %arg5[%c0_10, %c0_11] : memref<8x512xf32, #tpu.memory_space<vmem>>, vector<8x512xf32>
      %cst_12 = arith.constant dense<0.000000e+00> : vector<512xf32>
      %16 = vector.multi_reduction <add>, %15, %cst_12 [0] : vector<8x512xf32> to vector<512xf32>
      %17 = vector.shape_cast %16 : vector<512xf32> to vector<1x512xf32>
      %c0_13 = arith.constant 0 : index
      %c0_14 = arith.constant 0 : index
      %18 = vector.load %arg4[%c0_13, %c0_14] : memref<1x512xf32, #tpu.memory_space<vmem>>, vector<1x512xf32>
      tpu.vector_store %arg4[%c0_13, %c0_14], %17 {strides = array<i32>} : memref<1x512xf32, #tpu.memory_space<vmem>>, vector<1x512xf32>,
    } else {
    }
    return
  }
  func.func @transform_0(%arg0: i32, %arg1: i32) -> (i32, i32) {
    %c1_i32 = arith.constant 1 : i32
    %0 = arith.muli %arg0, %c1_i32 : i32
    %1 = arith.addi %0, %arg1 : i32
    %c0_i32 = arith.constant 0 : i32
    %c0_i32_0 = arith.constant 0 : i32
    return %1, %c0_i32 : i32, i32
  }
  func.func @transform_1(%arg0: i32, %arg1: i32) -> (i32, i32) {
    %c1_i32 = arith.constant 1 : i32
    %0 = arith.muli %arg0, %c1_i32 : i32
    %1 = arith.addi %0, %arg1 : i32
    %c0_i32 = arith.constant 0 : i32
    %c0_i32_0 = arith.constant 0 : i32
    return %1, %c0_i32 : i32, i32
  }
  func.func @transform_2(%arg0: i32, %arg1: i32) -> (i32, i32) {
    %c0_i32 = arith.constant 0 : i32
    %c0_i32_0 = arith.constant 0 : i32
    return %arg0, %c0_i32 : i32, i32
  }
}

</mosaic_0001>

<bundles_post_ra>
// kernel: tpu_custom_call.1
= control target key start
LH: loop header
LB: loop body
LE: loop exit
PB: predicated region body
PF: predicated region fallthrough
CT: control target
= control target key end

     0   :  { %7 = vsyncpa [#allocation4], 0  ;;  %s266_s0 = inlined_call_operand.hbm [shape: f32[8,512], index: 0, kind: input, shape index: {}]   ;;  %s267_s1 = inlined_call_operand.hbm [shape: f32[8,512], index: 1, kind: input, shape index: {}]   ;;  %s268_s2 = inlined_call_operand.hbm [shape: f32[1,512], index: 2, kind: output, shape index: {}]  }
   0x1   :  { %8 = vsyncpa [#allocation7], 0 }
   0x2   :  { %9 = vsyncpa [#allocation5], 0  ;;  %s19_s11 = sshll.u32 %s266_s0, 4  ;;  %s239_s12 = smov [#allocation3]   ;;  %s20_s11 = int_to_ptr.hbm [resolvable:$true] %s19_s11 }
   0x3   :  { %s21_s13 = sshll.u32 %s239_s12, 4  ;;  %s34_s16 = sshll.u32 %s267_s1, 4  ;;  %s22_s13 = int_to_ptr.vmem [resolvable:$true] %s21_s13  ;;  %s35_s16 = int_to_ptr.hbm [resolvable:$true] %s34_s16 }
   0x4   :  { %24 = dma.hbm_to_vmem [thread:$0]  %s20_s11, 512, %s22_s13, [#allocation4]  }
   0x5   :  { %s240_s17 = smov [#allocation6]  }
   0x6   :  { %s36_s18 = sshll.u32 %s240_s17, 4  ;;  %s37_s18 = int_to_ptr.vmem [resolvable:$true] %s36_s18 }
   0x7   :  { %39 = dma.hbm_to_vmem [thread:$0]  %s35_s16, 512, %s37_s18, [#allocation7]  }
   0x8   :  { %233 = dma.done.wait [#allocation4], 512  }
   0x9   :  { %234 = vsyncadd [#allocation4], 4294966784 }
   0xa   :  { %235 = dma.done.wait [#allocation7], 512  }
   0xb   :  { %236 = vsyncadd [#allocation7], 4294966784  ;;  %v58_v0 = vld [vmem:[#allocation3] sm:$0xff]  ;;  %v59_v1 = vld [vmem:[#allocation3 + $0x8] sm:$0xff]  ;;  %v135_v38 = vlaneseq  ;;  %vm128_vm0 = vcmask 1040384   ;;  %vm130_vm1 = vcmask 1042434  }
   0xc   :  { %v60_v2 = vld [vmem:[#allocation3 + $0x10] sm:$0xff]  ;;  %v61_v3 = vld [vmem:[#allocation3 + $0x18] sm:$0xff]  ;;  %v62_v4 = vld [vmem:[#allocation6] sm:$0xff]  ;;  %s241_s0 = smov [#allocation8]   ;;  %s147_s21 = sshll.u32 %s268_s2, 4  ;;  %vm132_vm2 = vcmask 1041408   ;;  %s148_s21 = int_to_ptr.hbm [resolvable:$true] %s147_s21 }
   0xd   :  { %v63_v5 = vld [vmem:[#allocation6 + $0x8] sm:$0xff]  ;;  %v64_v6 = vld [vmem:[#allocation6 + $0x10] sm:$0xff]  ;;  %v65_v7 = vld [vmem:[#allocation6 + $0x18] sm:$0xff]  ;;  %v66_v8 = vsub.f32 %v58_v0, %v62_v4  ;;  %s145_s1 = sshll.u32 %s241_s0, 4  ;;  %vm137_vm3 = vcmp.lt.s32.totalorder %v135_v38, 512  ;;  %s146_s1 = int_to_ptr.vmem [resolvable:$true] %s145_s1 }
   0xe   :  { %v67_v9 = vsub.f32 %v59_v1, %v63_v5  ;;  %v68_v10 = vsub.f32 %v60_v2, %v64_v6  ;;  %v69_v11 = vsub.f32 %v61_v3, %v65_v7 }
   0xf   :  { %v70_v12 = vmul.f32 %v66_v8, %v66_v8 }
  0x10   :  { %v71_v13 = vmul.f32 %v67_v9, %v67_v9  ;;  %v72_v14 = vmul.f32 %v68_v10, %v68_v10  ;;  %v73_v15 = vmul.f32 %v69_v11, %v69_v11 }
  0x11   :  { %v97_v16 = vrot.slane %v70_v12, 4 }
  0x12   :  { %v103_v17 = vrot.slane %v71_v13, 4  ;;  %v109_v18 = vrot.slane %v72_v14, 4  ;;  %v115_v19 = vrot.slane %v73_v15, 4 }
  0x13   :  { %v98_v20 = vadd.f32 %v97_v16, %v70_v12 }
  0x14   :  { %v104_v21 = vadd.f32 %v103_v17, %v71_v13  ;;  %v110_v22 = vadd.f32 %v109_v18, %v72_v14  ;;  %v116_v23 = vadd.f32 %v115_v19, %v73_v15 }
  0x15   :  { %v99_v24 = vrot.slane %v98_v20, 2 }
  0x16   :  { %v105_v25 = vrot.slane %v104_v21, 2  ;;  %v111_v26 = vrot.slane %v110_v22, 2  ;;  %v117_v27 = vrot.slane %v116_v23, 2 }
  0x17   :  { %v100_v28 = vadd.f32 %v99_v24, %v98_v20 }
  0x18   :  { %v106_v29 = vadd.f32 %v105_v25, %v104_v21  ;;  %v112_v30 = vadd.f32 %v111_v26, %v110_v22  ;;  %v118_v31 = vadd.f32 %v117_v27, %v116_v23 }
  0x19   :  { %v101_v32 = vrot.slane %v100_v28, 1 }
  0x1a   :  { %v107_v33 = vrot.slane %v106_v29, 1  ;;  %v113_v34 = vrot.slane %v112_v30, 1  ;;  %v119_v35 = vrot.slane %v118_v31, 1 }
  0x1b   :  { %v102_v36 = vadd.f32 %v101_v32, %v100_v28 }
  0x1c   :  { %v108_v37 = vadd.f32 %v107_v33, %v106_v29  ;;  %v114_v39 = vadd.f32 %v113_v34, %v112_v30  ;;  %v120_v40 = vadd.f32 %v119_v35, %v118_v31 }
  0x1e   :  { %v125_v41 = vrot.slane %v108_v37, 7  ;;  %v126_v42 = vrot.slane %v114_v39, 6  ;;  %v127_v43 = vrot.slane %v120_v40, 5 }
  0x20   :  { %v129_v44 = vsel %vm128_vm0, %v102_v36, %v125_v41  ;;  %v131_v45 = vsel %vm130_vm1, %v126_v42, %v127_v43 }
  0x21   :  { %v133_v46 = vsel %vm132_vm2, %v129_v44, %v131_v45 }
  0x22   :  { %139 = vst.msk [vmem:[#allocation8] sm:$0xf] %vm137_vm3, %v133_v46 }
  0x23   :  { %150 = dma.vmem_to_hbm [thread:$0]  %s146_s1, 64, %s148_s21, [#allocation5]  }
  0x24   :  { %237 = dma.done.wait [#allocation5], 64  }
  0x25   :  { %238 = vsyncadd [#allocation5], 4294967232 }
  0x26   :  { %155 = vsyncpa [#allocation4], 1 }
  0x27   :  { %156 = vsyncpa [#allocation7], 1 }
  0x28   :  { %157 = vsyncpa [#allocation5], 1 }

</bundles_post_ra>
